<compile_context>
chip_gen: v6e
topology: v6e:2x2x1
jax: 0.10.0
libtpu: 0.0.40
codegen_flags: <defaults>
</compile_context>

<pallas_src>
import math

import jax
import jax.numpy as jnp
from jax.experimental import pallas as pl
from jax.experimental.pallas import tpu as pltpu


def _round_up(n, m):
    return ((n + m - 1) // m) * m


def _cdiv(a, b):
    return (a + b - 1) // b


def critic_kernel(xa_ref, w1_ref, b1_ref, w2h_ref, w2x_ref, b2_ref,
                  w3_ref, b3_ref, o_ref):
    xa = xa_ref[...]                                   # (tb, S+A) bf16

    # fc1 + ReLU: bf16 MXU inputs, f32 accumulation, f32 bias / ReLU.
    h1 = jnp.dot(xa, w1_ref[...], preferred_element_type=jnp.float32)
    h1 = jnp.maximum(h1 + b1_ref[...], 0.0)

    # fc2 on cat([h1, action], dim=1) + ReLU, concat-free:
    #   fc2(cat) == h1 @ W2h + xa @ W2x + b2   (W2x's state rows are zero)
    h2 = (jnp.dot(h1.astype(jnp.bfloat16), w2h_ref[...],
                  preferred_element_type=jnp.float32)
          + jnp.dot(xa, w2x_ref[...], preferred_element_type=jnp.float32)
          + b2_ref[...])
    h2 = jnp.maximum(h2, 0.0)

    # fc3 (out_features = 1): f32 VPU multiply + lane reduction; padded lanes
    # of w3 are exactly zero, so this matches the unpadded model.
    o_ref[...] = jnp.sum(h2 * w3_ref[...], axis=-1, keepdims=True) + b3_ref[0, 0]


def _choose_tiles(B, block_b):
    # Cap block_b so the per-step working set (double-buffered xa blocks +
    # resident weights + h1/h2 f32 temporaries) stays well under v7x's
    # 64 MiB-per-TC VMEM (~30 MiB at tb=4096).
    block_b = max(8, min(block_b, 4096))
    n_tiles = _cdiv(B, block_b)
    # v7x has 2 TensorCores: give the "parallel" batch axis >= 2 grid steps
    # whenever the batch is large enough that the split isn't pure overhead.
    if n_tiles == 1 and B >= 256:
        n_tiles = 2
    tb = _round_up(_cdiv(B, n_tiles), 8)
    return n_tiles, tb, n_tiles * tb


def critic_forward(x, action, padded_params, *, block_b=2048):
    """x: (B, num_state) f32, action: (B, num_action) f32 -> (B, 1) f32."""
    B, S = x.shape
    A = action.shape[1]
    w1, b1, w2h, w2x, b2, w3, b3 = padded_params
    SA, H1 = w1.shape
    H2 = w2h.shape[1]
    assert SA == S + A

    n_tiles, tb, Bp = _choose_tiles(B, block_b)

    # Single activation stream [x | action]; cast once to bf16 for the MXU
    # (halves the dominant HBM read stream).
    xa = jnp.concatenate([x, action], axis=1).astype(jnp.bfloat16)
    if Bp != B:
        xa = jnp.pad(xa, ((0, Bp - B), (0, 0)))

    def resident(arr):
        # Constant block index -> weight/bias stays VMEM-resident across steps.
        return pl.BlockSpec(arr.shape, lambda i: (0, 0))

    flops = 2 * Bp * (SA * H1 + H1 * H2 + SA * H2 + H2)
    bytes_accessed = (2 * Bp * SA + 4 * Bp                    # xa in, out
                      + 2 * (SA * H1 + H1 * H2 + SA * H2)     # bf16 weights
                      + 4 * (H1 + 2 * H2 + 1))                # f32 biases + w3

    out = pl.pallas_call(
        critic_kernel,
        out_shape=jax.ShapeDtypeStruct((Bp, 1), jnp.float32),
        grid=(n_tiles,),
        in_specs=[
            pl.BlockSpec((tb, SA), lambda i: (i, 0)),            # xa (bf16)
            resident(w1),                                        # (S+A, H1) bf16
            resident(b1),                                        # (1, H1)   f32
            resident(w2h),                                       # (H1, H2)  bf16
            resident(w2x),                                       # (S+A, H2) bf16
            resident(b2),                                        # (1, H2)   f32
            resident(w3),                                        # (1, H2)   f32
            pl.BlockSpec(memory_space=pltpu.MemorySpace.SMEM),   # b3 (1, 1) f32
        ],
        out_specs=pl.BlockSpec((tb, 1), lambda i: (i, 0)),
        compiler_params=pltpu.CompilerParams(
            dimension_semantics=("parallel",),
            vmem_limit_bytes=48 * 1024 * 1024,
        ),
        cost_estimate=pl.CostEstimate(
            flops=flops, transcendentals=0, bytes_accessed=bytes_accessed),
    )(xa, w1, b1, w2h, w2x, b2, w3, b3)

    return out[:B] if Bp != B else out


def init_logical_params(key, num_state, num_action, hidden=(400, 300),
                        init_w=0.003):
    """Unpadded params matching the PyTorch module's init (weights stored
    transposed as (in_features, out_features))."""
    h1, h2 = hidden
    ks = jax.random.split(key, 6)

    # PyTorch: nn.init.uniform_(weight, -1/sqrt(weight.size(0)), ...) where
    # weight.size(0) is OUT features for nn.Linear.
    bw1 = 1.0 / math.sqrt(h1)
    bw2 = 1.0 / math.sqrt(h2)
    w1 = jax.random.uniform(ks[0], (num_state, h1), jnp.float32, -bw1, bw1)
    w2 = jax.random.uniform(ks[1], (h1 + num_action, h2), jnp.float32, -bw2, bw2)
    w3 = jax.random.uniform(ks[2], (h2, 1), jnp.float32, -init_w, init_w)

    # Biases keep nn.Linear default: U(-1/sqrt(fan_in), 1/sqrt(fan_in)).
    bb1 = 1.0 / math.sqrt(num_state)
    bb2 = 1.0 / math.sqrt(h1 + num_action)
    bb3 = 1.0 / math.sqrt(h2)
    b1 = jax.random.uniform(ks[3], (1, h1), jnp.float32, -bb1, bb1)
    b2 = jax.random.uniform(ks[4], (1, h2), jnp.float32, -bb2, bb2)
    b3 = jax.random.uniform(ks[5], (1, 1), jnp.float32, -bb3, bb3)
    return (w1, b1, w2, b2, w3, b3)


def pad_params(logical_params, num_state, num_action, hidden=(400, 300)):
    """Zero-pad hidden dims to lane multiples (400->512, 300->384), split fc2's
    weight into hidden / action blocks aligned to the combined [x|a] input, and
    store the MXU weights in bf16."""
    h1, h2 = hidden
    h1p = _round_up(h1, 128)
    h2p = _round_up(h2, 128)
    w1, b1, w2, b2, w3, b3 = logical_params
    SA = num_state + num_action

    # fc1 weight, with zero rows for the action part of xa = [x | a].
    w1p = jnp.zeros((SA, h1p), jnp.float32).at[:num_state, :h1].set(w1)
    b1p = jnp.zeros((1, h1p), jnp.float32).at[:, :h1].set(b1)

    # fc2 weight split: hidden block and xa block (state rows are zero).
    w2h = jnp.zeros((h1p, h2p), jnp.float32).at[:h1, :h2].set(w2[:h1, :])
    w2x = jnp.zeros((SA, h2p), jnp.float32).at[num_state:, :h2].set(w2[h1:, :])
    b2p = jnp.zeros((1, h2p), jnp.float32).at[:, :h2].set(b2)

    # fc3 weight stored as a (1, H2) f32 row for the VPU-reduce final layer.
    w3p = jnp.zeros((1, h2p), jnp.float32).at[0, :h2].set(w3[:, 0])

    return (w1p.astype(jnp.bfloat16), b1p,
            w2h.astype(jnp.bfloat16), w2x.astype(jnp.bfloat16), b2p,
            w3p, b3)


def reference_forward(x, action, logical_params):
    """Pure-JAX f32 reference mirroring the PyTorch forward on UNPADDED params."""
    w1, b1, w2, b2, w3, b3 = logical_params
    h = jax.nn.relu(x @ w1 + b1)
    h = jax.nn.relu(jnp.concatenate([h, action], axis=1) @ w2 + b2)
    return h @ w3 + b3


if __name__ == "__main__":
    num_state = 16
    num_action = 4

    key = jax.random.PRNGKey(0)
    kx, ka, kp, kx2, ka2 = jax.random.split(key, 5)
    logical_params = init_logical_params(kp, num_state, num_action)
    padded_params = pad_params(logical_params, num_state, num_action)

    # Small smoke test (single grid step).
    batch = 2
    x = jax.random.normal(kx, (batch, num_state), jnp.float32)
    action = jax.random.normal(ka, (batch, num_action), jnp.float32)
    out = critic_forward(x, action, padded_params)
    jax.block_until_ready(out)
    ref = reference_forward(x, action, logical_params)
    assert out.shape == (batch, 1), out.shape
    assert jnp.allclose(out, ref, atol=2e-2, rtol=2e-2), (out, ref)

    # Multi-tile, ragged-batch path (forced grid of 2 -> v7x TC sharding).
    batch2 = 300
    x2 = jax.random.normal(kx2, (batch2, num_state), jnp.float32)
    a2 = jax.random.normal(ka2, (batch2, num_action), jnp.float32)
    out2 = critic_forward(x2, a2, padded_params)
    jax.block_until_ready(out2)
    ref2 = reference_forward(x2, a2, logical_params)
    assert out2.shape == (batch2, 1), out2.shape
    assert jnp.allclose(out2, ref2, atol=2e-2, rtol=2e-2), \
        float(jnp.abs(out2 - ref2).max())

    print("KERNEL_OK")
</pallas_src>

<mosaic_0001>
module attributes {stable_mosaic.version = 11 : i64} {
  func.func @critic_kernel(%arg0: i32, %arg1: memref<8x20xbf16, #tpu.memory_space<vmem>>, %arg2: memref<20x512xbf16, #tpu.memory_space<vmem>>, %arg3: memref<1x512xf32, #tpu.memory_space<vmem>>, %arg4: memref<512x384xbf16, #tpu.memory_space<vmem>>, %arg5: memref<20x384xbf16, #tpu.memory_space<vmem>>, %arg6: memref<1x384xf32, #tpu.memory_space<vmem>>, %arg7: memref<1x384xf32, #tpu.memory_space<vmem>>, %arg8: memref<1x1xf32, #tpu.memory_space<smem>>, %arg9: memref<8x1xf32, #tpu.memory_space<vmem>>) attributes {dimension_semantics = [#tpu.dimension_semantics<parallel>], iteration_bounds = array<i64: 1>, scalar_prefetch = 0 : i64, scratch_operands = 0 : i64, tpu.core_type = #tpu.core_type<tc>, window_params = [{transform_indices = @transform_0, window_bounds = array<i64: 8, 20>}, {pipeline_mode = #tpu.pipeline_mode<synchronous>, transform_indices = @transform_1, window_bounds = array<i64: 20, 512>}, {pipeline_mode = #tpu.pipeline_mode<synchronous>, transform_indices = @transform_2, window_bounds = array<i64: 1, 512>}, {pipeline_mode = #tpu.pipeline_mode<synchronous>, transform_indices = @transform_3, window_bounds = array<i64: 512, 384>}, {pipeline_mode = #tpu.pipeline_mode<synchronous>, transform_indices = @transform_4, window_bounds = array<i64: 20, 384>}, {pipeline_mode = #tpu.pipeline_mode<synchronous>, transform_indices = @transform_5, window_bounds = array<i64: 1, 384>}, {pipeline_mode = #tpu.pipeline_mode<synchronous>, transform_indices = @transform_6, window_bounds = array<i64: 1, 384>}, {transform_indices = @transform_7, window_bounds = array<i64: 1, 1>}, {transform_indices = @transform_8, window_bounds = array<i64: 8, 1>}]} {
    %c0 = arith.constant 0 : index
    %c0_0 = arith.constant 0 : index
    %0 = vector.load %arg1[%c0, %c0_0] : memref<8x20xbf16, #tpu.memory_space<vmem>>, vector<8x20xbf16>
    %c0_1 = arith.constant 0 : index
    %c0_2 = arith.constant 0 : index
    %1 = vector.load %arg2[%c0_1, %c0_2] : memref<20x512xbf16, #tpu.memory_space<vmem>>, vector<20x512xbf16>
    %cst = arith.constant dense<0.000000e+00> : vector<8x512xf32>
    %2 = tpu.matmul %0, %1, %cst {dimension_numbers = #tpu.dot_dimension_numbers<[1], [0], [0], [1], [0, 0, 1, 1], [], []>} : vector<8x20xbf16>, vector<20x512xbf16>, vector<8x512xf32> -> vector<8x512xf32>
    %c0_3 = arith.constant 0 : index
    %c0_4 = arith.constant 0 : index
    %3 = vector.load %arg3[%c0_3, %c0_4] : memref<1x512xf32, #tpu.memory_space<vmem>>, vector<1x512xf32>
    %4 = vector.broadcast %3 : vector<1x512xf32> to vector<8x512xf32>
    %5 = arith.addf %2, %4 : vector<8x512xf32>
    %cst_5 = arith.constant 0.000000e+00 : f32
    %6 = vector.broadcast %cst_5 : f32 to vector<8x512xf32>
    %7 = arith.maximumf %5, %6 : vector<8x512xf32>
    %8 = arith.truncf %7 : vector<8x512xf32> to vector<8x512xbf16>
    %c0_6 = arith.constant 0 : index
    %c0_7 = arith.constant 0 : index
    %9 = vector.load %arg4[%c0_6, %c0_7] : memref<512x384xbf16, #tpu.memory_space<vmem>>, vector<512x384xbf16>
    %cst_8 = arith.constant dense<0.000000e+00> : vector<8x384xf32>
    %10 = tpu.matmul %8, %9, %cst_8 {dimension_numbers = #tpu.dot_dimension_numbers<[1], [0], [0], [1], [0, 0, 1, 1], [], []>} : vector<8x512xbf16>, vector<512x384xbf16>, vector<8x384xf32> -> vector<8x384xf32>
    %c0_9 = arith.constant 0 : index
    %c0_10 = arith.constant 0 : index
    %11 = vector.load %arg5[%c0_9, %c0_10] : memref<20x384xbf16, #tpu.memory_space<vmem>>, vector<20x384xbf16>
    %cst_11 = arith.constant dense<0.000000e+00> : vector<8x384xf32>
    %12 = tpu.matmul %0, %11, %cst_11 {dimension_numbers = #tpu.dot_dimension_numbers<[1], [0], [0], [1], [0, 0, 1, 1], [], []>} : vector<8x20xbf16>, vector<20x384xbf16>, vector<8x384xf32> -> vector<8x384xf32>
    %13 = arith.addf %10, %12 : vector<8x384xf32>
    %c0_12 = arith.constant 0 : index
    %c0_13 = arith.constant 0 : index
    %14 = vector.load %arg6[%c0_12, %c0_13] : memref<1x384xf32, #tpu.memory_space<vmem>>, vector<1x384xf32>
    %15 = vector.broadcast %14 : vector<1x384xf32> to vector<8x384xf32>
    %16 = arith.addf %13, %15 : vector<8x384xf32>
    %cst_14 = arith.constant 0.000000e+00 : f32
    %17 = vector.broadcast %cst_14 : f32 to vector<8x384xf32>
    %18 = arith.maximumf %16, %17 : vector<8x384xf32>
    %c0_15 = arith.constant 0 : index
    %c0_16 = arith.constant 0 : index
    %19 = vector.load %arg7[%c0_15, %c0_16] : memref<1x384xf32, #tpu.memory_space<vmem>>, vector<1x384xf32>
    %20 = vector.broadcast %19 : vector<1x384xf32> to vector<8x384xf32>
    %21 = arith.mulf %18, %20 : vector<8x384xf32>
    %cst_17 = arith.constant dense<0.000000e+00> : vector<8xf32>
    %22 = vector.multi_reduction <add>, %21, %cst_17 [1] : vector<8x384xf32> to vector<8xf32>
    %23 = vector.shape_cast %22 : vector<8xf32> to vector<8x1xf32>
    %c0_18 = arith.constant 0 : index
    %c0_19 = arith.constant 0 : index
    %24 = memref.load %arg8[%c0_18, %c0_19] : memref<1x1xf32, #tpu.memory_space<smem>>
    %25 = vector.broadcast %24 : f32 to vector<8x1xf32>
    %26 = arith.addf %23, %25 : vector<8x1xf32>
    %c0_20 = arith.constant 0 : index
    %c0_21 = arith.constant 0 : index
    %27 = vector.load %arg9[%c0_20, %c0_21] : memref<8x1xf32, #tpu.memory_space<vmem>>, vector<8x1xf32>
    tpu.vector_store %arg9[%c0_20, %c0_21], %26 {strides = array<i32>} : memref<8x1xf32, #tpu.memory_space<vmem>>, vector<8x1xf32>,
    return
  }
  func.func @transform_0(%arg0: i32) -> (i32, i32) {
    %c0_i32 = arith.constant 0 : i32
    %c0_i32_0 = arith.constant 0 : i32
    return %arg0, %c0_i32 : i32, i32
  }
  func.func @transform_1(%arg0: i32) -> (i32, i32) {
    %c0_i32 = arith.constant 0 : i32
    %c0_i32_0 = arith.constant 0 : i32
    %c0_i32_1 = arith.constant 0 : i32
    return %c0_i32, %c0_i32_0 : i32, i32
  }
  func.func @transform_2(%arg0: i32) -> (i32, i32) {
    %c0_i32 = arith.constant 0 : i32
    %c0_i32_0 = arith.constant 0 : i32
    %c0_i32_1 = arith.constant 0 : i32
    return %c0_i32, %c0_i32_0 : i32, i32
  }
  func.func @transform_3(%arg0: i32) -> (i32, i32) {
    %c0_i32 = arith.constant 0 : i32
    %c0_i32_0 = arith.constant 0 : i32
    %c0_i32_1 = arith.constant 0 : i32
    return %c0_i32, %c0_i32_0 : i32, i32
  }
  func.func @transform_4(%arg0: i32) -> (i32, i32) {
    %c0_i32 = arith.constant 0 : i32
    %c0_i32_0 = arith.constant 0 : i32
    %c0_i32_1 = arith.constant 0 : i32
    return %c0_i32, %c0_i32_0 : i32, i32
  }
  func.func @transform_5(%arg0: i32) -> (i32, i32) {
    %c0_i32 = arith.constant 0 : i32
    %c0_i32_0 = arith.constant 0 : i32
    %c0_i32_1 = arith.constant 0 : i32
    return %c0_i32, %c0_i32_0 : i32, i32
  }
  func.func @transform_6(%arg0: i32) -> (i32, i32) {
    %c0_i32 = arith.constant 0 : i32
    %c0_i32_0 = arith.constant 0 : i32
    %c0_i32_1 = arith.constant 0 : i32
    return %c0_i32, %c0_i32_0 : i32, i32
  }
  func.func @transform_7(%arg0: i32) -> (i32, i32) {
    %c0_i32 = arith.constant 0 : i32
    %c0_i32_0 = arith.constant 0 : i32
    %c0_i32_1 = arith.constant 0 : i32
    return %c0_i32, %c0_i32_0 : i32, i32
  }
  func.func @transform_8(%arg0: i32) -> (i32, i32) {
    %c0_i32 = arith.constant 0 : i32
    %c0_i32_0 = arith.constant 0 : i32
    return %arg0, %c0_i32 : i32, i32
  }
}

</mosaic_0001>

<bundles_post_ra>
// kernel: tpu_custom_call.1
= control target key start
LH: loop header
LB: loop body
LE: loop exit
PB: predicated region body
PF: predicated region fallthrough
CT: control target
= control target key end

     0   :  { %14 = vsyncpa [#allocation4], 0  ;;  %s1771_s0 = inlined_call_operand.hbm [shape: bf16[8,20], index: 0, kind: input, shape index: {}]   ;;  %s1772_s1 = inlined_call_operand.hbm [shape: bf16[20,512], index: 1, kind: input, shape index: {}]   ;;  %s1773_s2 = inlined_call_operand.vmem [shape: f32[1,512], index: 2, kind: input, shape index: {}]   ;;  %s1774_s3 = inlined_call_operand.hbm [shape: bf16[512,384], index: 3, kind: input, shape index: {}]   ;;  %s1775_s4 = inlined_call_operand.hbm [shape: bf16[20,384], index: 4, kind: input, shape index: {}]   ;;  %s1776_s5 = inlined_call_operand.vmem [shape: f32[1,384], index: 5, kind: input, shape index: {}]   ;;  %s1777_s6 = inlined_call_operand.vmem [shape: f32[1,384], index: 6, kind: input, shape index: {}]   ;;  %s1778_s7 = inlined_call_operand.<no memory space> [shape: f32[1,1], index: 7, kind: input, shape index: {}]   ;;  %s1779_s8 = inlined_call_operand.vmem [shape: f32[8,1], index: 8, kind: output, shape index: {}]  }
   0x1   :  { %15 = vsyncpa [#allocation6], 0 }
   0x2   :  { %16 = vsyncpa [#allocation9], 0  ;;  %s1645_s27 = smov [#allocation5]  }
   0x3   :  { %s32_s28 = sshll.u32 %s1645_s27, 4  ;;  %s33_s28 = int_to_ptr.vmem [resolvable:$true] %s32_s28 }
   0x4   :  { %s1567_s29 = scalar_lea.vmem %s33_s28, 768  ;;  %p1572_p1 = scmp.lt.s32.totalorder %s33_s28, %s33_s28 }
   0x5   :  { %p1568_p0 = scmp.ne.s32.totalorder %s33_s28, %s1567_s29  ;;  %p1573_p2 = scmp.lt.s32.totalorder %s1567_s29, %s1567_s29 }
   0x7   :  { %p1574_p3 = por %p1573_p2, %p1572_p1 }
   0x9   :  { %p1575_p4 = pnand %p1574_p3, %p1568_p0 }
   0xb   :  { %1578 = shalt.err (!%p1575_p4)
}
   0xc   :  { %s1646_s30 = smov 256   ;;  %s1647_s9 = smov 16  }
   0xd   :  { %38 = dma.hbm_to_vmem [thread:$0]  %s1772_s1, 768, %s33_s28, [#allocation6], %s1646_s30, %s1646_s30, %s1647_s9  }
   0xe   :  { %s1648_s12 = smov [#allocation3]   ;;  %s1649_s14 = smov [#allocation7]  }
   0xf   :  { %s23_s13 = sshll.u32 %s1648_s12, 4  ;;  %s46_s15 = sshll.u32 %s1649_s14, 4  ;;  %s24_s13 = int_to_ptr.vmem [resolvable:$true] %s23_s13  ;;  %s47_s15 = int_to_ptr.vmem [resolvable:$true] %s46_s15 }
  0x10   :  { %s1587_s16 = scalar_lea.vmem %s24_s13, 64  ;;  %p1592_p6 = scmp.lt.s32.totalorder %s24_s13, %s24_s13 }
  0x11   :  { %p1588_p5 = scmp.ne.s32.totalorder %s24_s13, %s1587_s16  ;;  %p1593_p7 = scmp.lt.s32.totalorder %s1587_s16, %s1587_s16 }
  0x13   :  { %p1594_p8 = por %p1593_p7, %p1592_p6 }
  0x15   :  { %p1595_p9 = pnand %p1594_p8, %p1588_p5 }
  0x17   :  { %1598 = shalt.err (!%p1595_p9)
}
  0x18   :  { %26 = dma.hbm_to_vmem [thread:$0]  %s1771_s0, 64, %s24_s13, [#allocation4]  }
  0x19   :  { %s1607_s19 = scalar_lea.vmem %s47_s15, 12288  ;;  %p1612_p11 = scmp.lt.s32.totalorder %s47_s15, %s47_s15 }
  0x1a   :  { %p1608_p10 = scmp.ne.s32.totalorder %s47_s15, %s1607_s19  ;;  %p1613_p12 = scmp.lt.s32.totalorder %s1607_s19, %s1607_s19 }
  0x1c   :  { %p1614_p13 = por %p1613_p12, %p1612_p11 }
  0x1e   :  { %p1615_p0 = pnand %p1614_p13, %p1608_p10 }
  0x20   :  { %1618 = shalt.err (!%p1615_p0)
}
  0x21   :  { %s1650_s1 = smov 192   ;;  %s1651_s20 = smov 12  }
  0x22   :  { %52 = dma.hbm_to_vmem [thread:$0]  %s1774_s3, 12288, %s47_s15, [#allocation6], %s1650_s1, %s1650_s1, %s1651_s20  }
  0x23   :  { %s1652_s23 = smov [#allocation8]  }
  0x24   :  { %s58_s24 = sshll.u32 %s1652_s23, 4  ;;  %s59_s24 = int_to_ptr.vmem [resolvable:$true] %s58_s24 }
  0x25   :  { %s1627_s25 = scalar_lea.vmem %s59_s24, 576  ;;  %p1632_p2 = scmp.lt.s32.totalorder %s59_s24, %s59_s24 }
  0x26   :  { %p1628_p1 = scmp.ne.s32.totalorder %s59_s24, %s1627_s25  ;;  %p1633_p3 = scmp.lt.s32.totalorder %s1627_s25, %s1627_s25 }
  0x28   :  { %p1634_p4 = por %p1633_p3, %p1632_p2 }
  0x2a   :  { %p1635_p5 = pnand %p1634_p4, %p1628_p1 }
  0x2c   :  { %1638 = shalt.err (!%p1635_p5)
}
  0x2d   :  { %64 = dma.hbm_to_vmem [thread:$0]  %s1775_s4, 576, %s59_s24, [#allocation9], %s1650_s1, %s1650_s1, %s1651_s20  }
  0x2e   :  { %1639 = dma.done.wait [#allocation4], 64  }
  0x2f   :  { %1640 = vsyncadd [#allocation4], 4294967232 }
  0x30   :  { %1641 = dma.done.wait [#allocation6], 13056  }
  0x31   :  { %1642 = vsyncadd [#allocation6], 4294954240 }
  0x32   :  { %1643 = dma.done.wait [#allocation9], 576  }
  0x33   :  { %1644 = vsyncadd [#allocation9], 4294966720  ;;  %v1653_v0 = vmov 0   ;;  %v89_v1 = vld [vmem:[#allocation5 + $0x20] sm:$0x33]  ;;  %vm147_vm0 = vcmask 1041408  }
  0x34   :  { %192 = vmatprep.mubr.bf16.mxu0 %v1653_v0  ;;  %233 = vmatprep.mubr.bf16.mxu1 %v1653_v0  ;;  %v90_v2 = vld [vmem:[#allocation5 + $0x28] sm:$0x33]  ;;  %v1236_v3 = vcombine.high %v89_v1, %v89_v1  ;;  %v1235_v5 = vcombine.low %v89_v1, %v89_v1  ;;  %v1418_v7 = vld [vmem:[#allocation5 + $0x4] ss:$16 sps:$4 sm:$0xff]   ;;  %v1422_v11 = vld [vmem:[#allocation5] ss:$16 sps:$4 sm:$0xff]  }
  0x35   :  { %v1238_v4 = vcombine.high %v90_v2, %v90_v2  ;;  %v1237_v6 = vcombine.low %v90_v2, %v90_v2  ;;  %v1420_v8 = vld [vmem:[#allocation5 + $0xc] ss:$16 sps:$4 sm:$0xff]   ;;  %v1423_v12 = vld [vmem:[#allocation5 + $0x8] ss:$16 sps:$4 sm:$0xff]   ;;  %vm143_vm1 = vcmask 162816   ;;  %v1654_v19 = vmov 0.0  }
  0x36   :  { %1239 = vmatprep.subr.msk.bf16.mxu0 %vm147_vm0, %v1236_v3  ;;  %v149_v9 = vsel %vm147_vm0, %v1235_v5, 0  ;;  %v382_v13 = vld [vmem:[#allocation8 + $0x18] sm:$0x33]  ;;  %v1426_v16 = vld [vmem:[#allocation8 + $0x20] ss:$0 sps:$4 sm:$0x33]  }
  0x37   :  { %1241 = vmatprep.subr.msk.bf16.mxu1 %vm147_vm0, %v1238_v4  ;;  %v155_v10 = vsel %vm147_vm0, %v1237_v6, 0  ;;  %173 = vmatpush1.bf16.msra.mxu0 %v149_v9  ;;  %v1247_v14 = vcombine.high %v382_v13, %v382_v13  ;;  %v1246_v15 = vcombine.low %v382_v13, %v382_v13  ;;  %v84_v17 = vld [vmem:[#allocation3] sm:$0xf]  ;;  %v415_v20 = vsel %vm147_vm0, %v1426_v16, 0  ;;  %v1429_v21 = vld [vmem:[#allocation8 + $0x4] ss:$12 sps:$4 sm:$0xff]  }
  0x38   :  { %214 = vmatpush1.bf16.msra.mxu1 %v155_v10  ;;  %174 = vmatprep.subr.bf16.mxu0 %v1418_v7  ;;  %v1427_v22 = vld [vmem:[#allocation8] ss:$12 sps:$4 sm:$0xff]   ;;  %v1430_v23 = vld [vmem:[#allocation8 + $0x8] ss:$12 sps:$4 sm:$0xff]   ;;  %vm1655_vm2 = vmmov 0   ;;  %vm1222_vm3 = vcmask 7168  }
  0x39   :  { %215 = vmatprep.subr.bf16.mxu1 %v1420_v8  ;;  %v409_v18 = vsel %vm147_vm0, %v1246_v15, 0  ;;  %v1433_v24 = vld [vmem:[#allocation7 + $0xac] ss:$12 sps:$4 sm:$0xff]   ;;  %v1431_v26 = vld [vmem:[#allocation7 + $0xa8] ss:$12 sps:$4 sm:$0xff]  }
  0x3a   :  { %v1436_v25 = vld [vmem:[#allocation7 + $0x22c] ss:$12 sps:$4 sm:$0xff]   ;;  %v1434_v27 = vld [vmem:[#allocation7 + $0x228] ss:$12 sps:$4 sm:$0xff]   ;;  %v1437_v30 = vld [vmem:[#allocation7 + $0x90] ss:$12 sps:$4 sm:$0xff]  }
  0x3b   :  { %175 = vmatpush1.bf16.msra.mxu0 %v1422_v11  ;;  %v1439_v28 = vld [vmem:[#allocation7 + $0x94] ss:$12 sps:$4 sm:$0xff]   ;;  %v1440_v31 = vld [vmem:[#allocation7 + $0x210] ss:$12 sps:$4 sm:$0xff]   ;;  %v1443_v34 = vld [vmem:[#allocation7 + $0x78] ss:$12 sps:$4 sm:$0xff]  }
  0x3c   :  { %216 = vmatpush1.bf16.msra.mxu1 %v1423_v12  ;;  %1249 = vmatprep.subr.msk.bf16.mxu0 %vm147_vm0, %v1247_v14  ;;  %v1442_v29 = vld [vmem:[#allocation7 + $0x214] ss:$12 sps:$4 sm:$0xff]   ;;  %v1445_v32 = vld [vmem:[#allocation7 + $0x7c] ss:$12 sps:$4 sm:$0xff]   ;;  %v1446_v35 = vld [vmem:[#allocation7 + $0x1f8] ss:$12 sps:$4 sm:$0xff]  }
  0x3d   :  { %1395 = vmatprep.subr.bf16.mxu1 %v1654_v19  ;;  %v1448_v33 = vld [vmem:[#allocation7 + $0x1fc] ss:$12 sps:$4 sm:$0xff]   ;;  %v1451_v36 = vld [vmem:[#allocation7 + $0x64] ss:$12 sps:$4 sm:$0xff]   ;;  %v1449_v38 = vld [vmem:[#allocation7 + $0x60] ss:$12 sps:$4 sm:$0xff]  }
  0x3e   :  { %1240 = vmatmul.mubr.msk.bf16.vlgmr.msra.gmra.mxu0 %vm143_vm1, %v84_v17  ;;  %v1454_v37 = vld [vmem:[#allocation7 + $0x1e4] ss:$12 sps:$4 sm:$0xff]   ;;  %v1452_v39 = vld [vmem:[#allocation7 + $0x1e0] ss:$12 sps:$4 sm:$0xff]   ;;  %v1455_v42 = vld [vmem:[#allocation7 + $0x48] ss:$12 sps:$4 sm:$0xff]  }
  0x3f   :  { %1242 = vmatmul.mubr.msk.bf16.vlgmr.msra.gmra.mxu1 %vm143_vm1, %v84_v17  ;;  %430 = vmatpush1.bf16.msra.mxu0 %v409_v18  ;;  %v1457_v40 = vld [vmem:[#allocation7 + $0x4c] ss:$12 sps:$4 sm:$0xff]   ;;  %v1458_v43 = vld [vmem:[#allocation7 + $0x1c8] ss:$12 sps:$4 sm:$0xff]   ;;  %v1461_v46 = vld [vmem:[#allocation7 + $0x30] ss:$12 sps:$4 sm:$0xff]  }
  0x40   :  { %1396 = vmatpush3.bf16.msra.mxu1 %v415_v20  ;;  %431 = vmatprep.subr.bf16.mxu0 %v1429_v21  ;;  %v1460_v41 = vld [vmem:[#allocation7 + $0x1cc] ss:$12 sps:$4 sm:$0xff]   ;;  %v1463_v44 = vld [vmem:[#allocation7 + $0x34] ss:$12 sps:$4 sm:$0xff]   ;;  %v1464_v47 = vld [vmem:[#allocation7 + $0x1b0] ss:$12 sps:$4 sm:$0xff]  }
  0x41   :  { %1397 = vmatprep.subr.bf16.mxu1 %v1654_v19  ;;  %449 = vmatprep.mubr.bf16.mxu0 %v1653_v0  ;;  %v1466_v45 = vld [vmem:[#allocation7 + $0x1b4] ss:$12 sps:$4 sm:$0xff]   ;;  %v1469_v48 = vld [vmem:[#allocation7 + $0x1c] ss:$12 sps:$4 sm:$0xff]   ;;  %v1467_v50 = vld [vmem:[#allocation7 + $0x18] ss:$12 sps:$4 sm:$0xff]  }
  0x42   :  { %1399 = vmatprep.mubr.msk.bf16.mxu1 %vm1655_vm2, %v1654_v19  ;;  %v1472_v49 = vld [vmem:[#allocation7 + $0x19c] ss:$12 sps:$4 sm:$0xff]   ;;  %v1470_v51 = vld [vmem:[#allocation7 + $0x198] ss:$12 sps:$4 sm:$0xff]   ;;  %v1473_v54 = vld [vmem:[#allocation7] ss:$12 sps:$4 sm:$0xff]  }
  0x43   :  { %432 = vmatpush1.bf16.msra.mxu0 %v1427_v22  ;;  %v1475_v52 = vld [vmem:[#allocation7 + $0x4] ss:$12 sps:$4 sm:$0xff]   ;;  %v1476_v55 = vld [vmem:[#allocation7 + $0x180] ss:$12 sps:$4 sm:$0xff]   ;;  %v1479_v58 = vld [vmem:[#allocation7 + $0x168] ss:$12 sps:$4 sm:$0xff]  }
  0x44   :  { %1398 = vmatpush3.bf16.msra.mxu1 %v1430_v23  ;;  %1010 = vmatprep.subr.bf16.mxu0 %v1433_v24  ;;  %v1478_v53 = vld [vmem:[#allocation7 + $0x184] ss:$12 sps:$4 sm:$0xff]   ;;  %v1481_v56 = vld [vmem:[#allocation7 + $0x16c] ss:$12 sps:$4 sm:$0xff]   ;;  %v1482_v59 = vld [vmem:[#allocation7 + $0x2e8] ss:$12 sps:$4 sm:$0xff]  }
  0x45   :  { %1051 = vmatprep.subr.bf16.mxu1 %v1436_v25  ;;  %v1484_v57 = vld [vmem:[#allocation7 + $0x2ec] ss:$12 sps:$4 sm:$0xff]   ;;  %v1487_v60 = vld [vmem:[#allocation7 + $0x154] ss:$12 sps:$4 sm:$0xff]   ;;  %v1485_v62 = vld [vmem:[#allocation7 + $0x150] ss:$12 sps:$4 sm:$0xff]  }
  0x46   :  { %1250 = vmatmul.mubr.msk.bf16.vlgmr.msra.gmra.mxu0 %vm143_vm1, %v84_v17  ;;  %v1490_v61 = vld [vmem:[#allocation7 + $0x2d4] ss:$12 sps:$4 sm:$0xff]   ;;  %v1488_v63 = vld [vmem:[#allocation7 + $0x2d0] ss:$12 sps:$4 sm:$0xff]   ;;  %v1491_v2 = vld [vmem:[#allocation7 + $0x138] ss:$12 sps:$4 sm:$0xff]  }
  0x47   :  { %1400 = vmatmul.mubr.msk.bf16.vlgmr.msra.gmra.mxu1 %vm143_vm1, %v84_v17  ;;  %1011 = vmatpush1.bf16.msra.mxu0 %v1431_v26  ;;  %v1493_v0 = vld [vmem:[#allocation7 + $0x13c] ss:$12 sps:$4 sm:$0xff]   ;;  %v1494_v3 = vld [vmem:[#allocation7 + $0x2b8] ss:$12 sps:$4 sm:$0xff]   ;;  %v1497_v6 = vld [vmem:[#allocation7 + $0x120] ss:$12 sps:$4 sm:$0xff]   ;;  %v93_v26 = vlaneseq }
  0x48   :  { %1052 = vmatpush1.bf16.msra.mxu1 %v1434_v27  ;;  %1012 = vmatprep.subr.bf16.mxu0 %v1439_v28  ;;  %v1496_v1 = vld [vmem:[#allocation7 + $0x2bc] ss:$12 sps:$4 sm:$0xff]   ;;  %v1499_v4 = vld [vmem:[#allocation7 + $0x124] ss:$12 sps:$4 sm:$0xff]   ;;  %v1500_v7 = vld [vmem:[#allocation7 + $0x2a0] ss:$12 sps:$4 sm:$0xff]  }
  0x49   :  { %1053 = vmatprep.subr.bf16.mxu1 %v1442_v29  ;;  %v1502_v5 = vld [vmem:[#allocation7 + $0x2a4] ss:$12 sps:$4 sm:$0xff]   ;;  %v1505_v8 = vld [vmem:[#allocation7 + $0x10c] ss:$12 sps:$4 sm:$0xff]   ;;  %v1503_v10 = vld [vmem:[#allocation7 + $0x108] ss:$12 sps:$4 sm:$0xff]  }
  0x4a   :  { %v1508_v9 = vld [vmem:[#allocation7 + $0x28c] ss:$12 sps:$4 sm:$0xff]   ;;  %v1506_v11 = vld [vmem:[#allocation7 + $0x288] ss:$12 sps:$4 sm:$0xff]   ;;  %v1509_v14 = vld [vmem:[#allocation7 + $0xf0] ss:$12 sps:$4 sm:$0xff]  }
  0x4b   :  { %1013 = vmatpush1.bf16.msra.mxu0 %v1437_v30  ;;  %v1511_v12 = vld [vmem:[#allocation7 + $0xf4] ss:$12 sps:$4 sm:$0xff]   ;;  %v1512_v15 = vld [vmem:[#allocation7 + $0x270] ss:$12 sps:$4 sm:$0xff]   ;;  %v1515_v18 = vld [vmem:[#allocation7 + $0xd8] ss:$12 sps:$4 sm:$0xff]  }
  0x4c   :  { %1054 = vmatpush1.bf16.msra.mxu1 %v1440_v31  ;;  %1014 = vmatprep.subr.bf16.mxu0 %v1445_v32  ;;  %v1514_v13 = vld [vmem:[#allocation7 + $0x274] ss:$12 sps:$4 sm:$0xff]   ;;  %v1517_v16 = vld [vmem:[#allocation7 + $0xdc] ss:$12 sps:$4 sm:$0xff]   ;;  %v1518_v19 = vld [vmem:[#allocation7 + $0x258] ss:$12 sps:$4 sm:$0xff]  }
  0x4d   :  { %1055 = vmatprep.subr.bf16.mxu1 %v1448_v33  ;;  %v1520_v17 = vld [vmem:[#allocation7 + $0x25c] ss:$12 sps:$4 sm:$0xff]   ;;  %v1523_v20 = vld [vmem:[#allocation7 + $0xc4] ss:$12 sps:$4 sm:$0xff]   ;;  %v1521_v22 = vld [vmem:[#allocation7 + $0xc0] ss:$12 sps:$4 sm:$0xff]  }
  0x4e   :  { %v1526_v21 = vld [vmem:[#allocation7 + $0x244] ss:$12 sps:$4 sm:$0xff]   ;;  %v1524_v23 = vld [vmem:[#allocation7 + $0x240] ss:$12 sps:$4 sm:$0xff]   ;;  %v94_v27 = vshrl.u32 %v93_v26, 7 }
  0x4f   :  { %1015 = vmatpush1.bf16.msra.mxu0 %v1443_v34  ;;  %v1527_v24 = vld [vmem:[#allocation7 + $0x170] ss:$12 sps:$4 sm:$0xff]   ;;  %v91_v30 = vld [vmem:[%s1773_s2] sm:$0xf] }
  0x50   :  { %1056 = vmatpush1.bf16.msra.mxu1 %v1446_v35  ;;  %1016 = vmatprep.subr.bf16.mxu0 %v1451_v36  ;;  %v1528_v25 = vld [vmem:[#allocation7 + $0x2f0] ss:$12 sps:$4 sm:$0xff]   ;;  %v1724_v28 = vsub.s32 0, %v94_v27  ;;  %v1726_v29 = vsub.s32 2, %v94_v27  ;;  %v1731_v31 = vsub.s32 1, %v94_v27  ;;  %v107_v32 = vsub.s32 3, %v94_v27 }
  0x51   :  { %1057 = vmatprep.subr.bf16.mxu1 %v1454_v37  ;;  %v1554_v26 = vld [vmem:[#allocation7 + $0x1a0] ss:$12 sps:$4 sm:$0xff]   ;;  %v1555_v27 = vld [vmem:[#allocation7 + $0xc8] ss:$12 sps:$4 sm:$0xff]  }
  0x52   :  { %v96_v33 = vrot.slane %v91_v30, %v1724_v28  ;;  %v104_v34 = vrot.slane %v91_v30, %v1726_v29  ;;  %v100_v35 = vrot.slane %v91_v30, %v1731_v31  ;;  %v108_v36 = vrot.slane %v91_v30, %v107_v32  ;;  %v1556_v30 = vld [vmem:[#allocation7 + $0x248] ss:$12 sps:$4 sm:$0xff]  }
  0x53   :  { %1017 = vmatpush1.bf16.msra.mxu0 %v1449_v38  ;;  %v1557_v32 = vld [vmem:[#allocation7 + $0x8] ss:$12 sps:$4 sm:$0xff]  }
  0x54   :  { %1058 = vmatpush1.bf16.msra.mxu1 %v1452_v39  ;;  %1018 = vmatprep.subr.bf16.mxu0 %v1457_v40 }
  0x55   :  { %1059 = vmatprep.subr.bf16.mxu1 %v1460_v41 }
  0x57   :  { %1019 = vmatpush1.bf16.msra.mxu0 %v1455_v42 }
  0x58   :  { %1060 = vmatpush1.bf16.msra.mxu1 %v1458_v43  ;;  %1020 = vmatprep.subr.bf16.mxu0 %v1463_v44 }
  0x59   :  { %1061 = vmatprep.subr.bf16.mxu1 %v1466_v45 }
  0x5b   :  { %1021 = vmatpush1.bf16.msra.mxu0 %v1461_v46 }
  0x5c   :  { %1062 = vmatpush1.bf16.msra.mxu1 %v1464_v47  ;;  %1022 = vmatprep.subr.bf16.mxu0 %v1469_v48 }
  0x5d   :  { %1063 = vmatprep.subr.bf16.mxu1 %v1472_v49 }
  0x5f   :  { %1023 = vmatpush1.bf16.msra.mxu0 %v1467_v50 }
  0x60   :  { %1064 = vmatpush1.bf16.msra.mxu1 %v1470_v51  ;;  %1024 = vmatprep.subr.bf16.mxu0 %v1475_v52 }
  0x61   :  { %1065 = vmatprep.subr.bf16.mxu1 %v1478_v53 }
  0x63   :  { %1025 = vmatpush1.bf16.msra.mxu0 %v1473_v54 }
  0x64   :  { %1066 = vmatpush1.bf16.msra.mxu1 %v1476_v55  ;;  %1026 = vmatprep.subr.bf16.mxu0 %v1481_v56  ;;  %v1529_v56 = vld [vmem:[#allocation7 + $0xb0] ss:$12 sps:$4 sm:$0xff]  }
  0x65   :  { %1067 = vmatprep.subr.bf16.mxu1 %v1484_v57  ;;  %v1530_v57 = vld [vmem:[#allocation7 + $0x230] ss:$12 sps:$4 sm:$0xff]  }
  0x67   :  { %1027 = vmatpush2.bf16.msra.mxu0 %v1479_v58 }
  0x68   :  { %1068 = vmatpush2.bf16.msra.mxu1 %v1482_v59  ;;  %1028 = vmatprep.subr.bf16.mxu0 %v1487_v60 }
  0x69   :  { %1069 = vmatprep.subr.bf16.mxu1 %v1490_v61  ;;  %v1531_v61 = vld [vmem:[#allocation7 + $0x158] ss:$12 sps:$4 sm:$0xff]  }
  0x6b   :  { %1029 = vmatpush2.bf16.msra.mxu0 %v1485_v62  ;;  %v1532_v62 = vld [vmem:[#allocation7 + $0x2d8] ss:$12 sps:$4 sm:$0xff]  }
  0x6c   :  { %1070 = vmatpush2.bf16.msra.mxu1 %v1488_v63  ;;  %1030 = vmatprep.subr.bf16.mxu0 %v1493_v0 }
  0x6d   :  { %1071 = vmatprep.subr.bf16.mxu1 %v1496_v1  ;;  %v1533_v1 = vld [vmem:[#allocation7 + $0x98] ss:$12 sps:$4 sm:$0xff]  }
  0x6f   :  { %1031 = vmatpush2.bf16.msra.mxu0 %v1491_v2  ;;  %v1534_v2 = vld [vmem:[#allocation7 + $0x218] ss:$12 sps:$4 sm:$0xff]  }
  0x70   :  { %1072 = vmatpush2.bf16.msra.mxu1 %v1494_v3  ;;  %1032 = vmatprep.subr.bf16.mxu0 %v1499_v4  ;;  %v1535_v3 = vld [vmem:[#allocation7 + $0x140] ss:$12 sps:$4 sm:$0xff]  }
  0x71   :  { %1073 = vmatprep.subr.bf16.mxu1 %v1502_v5  ;;  %v1536_v4 = vld [vmem:[#allocation7 + $0x2c0] ss:$12 sps:$4 sm:$0xff]  }
  0x73   :  { %1033 = vmatpush2.bf16.msra.mxu0 %v1497_v6 }
  0x74   :  { %1074 = vmatpush2.bf16.msra.mxu1 %v1500_v7  ;;  %1034 = vmatprep.subr.bf16.mxu0 %v1505_v8 }
  0x75   :  { %1075 = vmatprep.subr.bf16.mxu1 %v1508_v9  ;;  %v1537_v9 = vld [vmem:[#allocation7 + $0x80] ss:$12 sps:$4 sm:$0xff]  }
  0x77   :  { %1035 = vmatpush2.bf16.msra.mxu0 %v1503_v10  ;;  %v1538_v10 = vld [vmem:[#allocation7 + $0x200] ss:$12 sps:$4 sm:$0xff]  }
  0x78   :  { %1076 = vmatpush2.bf16.msra.mxu1 %v1506_v11  ;;  %1036 = vmatprep.subr.bf16.mxu0 %v1511_v12  ;;  %v1539_v11 = vld [vmem:[#allocation7 + $0x128] ss:$12 sps:$4 sm:$0xff]  }
  0x79   :  { %1077 = vmatprep.subr.bf16.mxu1 %v1514_v13  ;;  %v1540_v12 = vld [vmem:[#allocation7 + $0x2a8] ss:$12 sps:$4 sm:$0xff]  }
  0x7a   :  { %v1541_v13 = vld [vmem:[#allocation7 + $0x68] ss:$12 sps:$4 sm:$0xff]  }
  0x7b   :  { %1037 = vmatpush2.bf16.msra.mxu0 %v1509_v14  ;;  %v1542_v14 = vld [vmem:[#allocation7 + $0x1e8] ss:$12 sps:$4 sm:$0xff]  }
  0x7c   :  { %1078 = vmatpush2.bf16.msra.mxu1 %v1512_v15  ;;  %1038 = vmatprep.subr.bf16.mxu0 %v1517_v16  ;;  %v1543_v15 = vld [vmem:[#allocation7 + $0x110] ss:$12 sps:$4 sm:$0xff]  }
  0x7d   :  { %1079 = vmatprep.subr.bf16.mxu1 %v1520_v17  ;;  %v1544_v16 = vld [vmem:[#allocation7 + $0x290] ss:$12 sps:$4 sm:$0xff]  }
  0x7e   :  { %v1545_v17 = vld [vmem:[#allocation7 + $0x50] ss:$12 sps:$4 sm:$0xff]  }
  0x7f   :  { %1039 = vmatpush2.bf16.msra.mxu0 %v1515_v18  ;;  %v1546_v18 = vld [vmem:[#allocation7 + $0x1d0] ss:$12 sps:$4 sm:$0xff]  }
  0x80   :  { %1080 = vmatpush2.bf16.msra.mxu1 %v1518_v19  ;;  %1040 = vmatprep.subr.bf16.mxu0 %v1523_v20  ;;  %v1547_v19 = vld [vmem:[#allocation7 + $0xf8] ss:$12 sps:$4 sm:$0xff]  }
  0x81   :  { %1081 = vmatprep.subr.bf16.mxu1 %v1526_v21  ;;  %v1548_v20 = vld [vmem:[#allocation7 + $0x278] ss:$12 sps:$4 sm:$0xff]  }
  0x82   :  { %v1549_v21 = vld [vmem:[#allocation7 + $0x38] ss:$12 sps:$4 sm:$0xff]  }
  0x83   :  { %1041 = vmatpush2.bf16.msra.mxu0 %v1521_v22  ;;  %v1550_v22 = vld [vmem:[#allocation7 + $0x1b8] ss:$12 sps:$4 sm:$0xff]  }
  0x84   :  { %1082 = vmatpush2.bf16.msra.mxu1 %v1524_v23  ;;  %1351 = vmatprep.subr.bf16.mxu0 %v1527_v24  ;;  %v1551_v23 = vld [vmem:[#allocation7 + $0xe0] ss:$12 sps:$4 sm:$0xff]  }
  0x85   :  { %1373 = vmatprep.subr.bf16.mxu1 %v1528_v25  ;;  %v1552_v24 = vld [vmem:[#allocation7 + $0x260] ss:$12 sps:$4 sm:$0xff]  }
  0x86   :  { %v1553_v25 = vld [vmem:[#allocation7 + $0x20] ss:$12 sps:$4 sm:$0xff]  }
  0xfe   :  { %v194_v37 = vpop.f32.mrf.mxu0 }
  0xff   :  { %v235_v38 = vpop.f32.mrf.mxu1  ;;  %v195_v39 = vadd.f32 %v194_v37, %v96_v33  ;;  %v1558_v33 = vld [vmem:[#allocation7 + $0x188] ss:$12 sps:$4 sm:$0xff]  }
 0x100   :  { %v236_v40 = vadd.f32 %v235_v38, %v104_v34  ;;  %v196_v41 = vpop.f32.mrf.mxu0 }
 0x101   :  { %v237_v42 = vpop.f32.mrf.mxu1  ;;  %v197_v44 = vadd.f32 %v196_v41, %v100_v35  ;;  %v242_v46 = vmax.f32 %v195_v39, 0.0 }
 0x102   :  { %v244_v43 = vmax.f32 %v236_v40, 0.0  ;;  %v238_v45 = vadd.f32 %v237_v42, %v108_v36  ;;  %v198_v47 = vpop.f32.mrf.mxu0 }
 0x103   :  { %v239_v48 = vpop.f32.mrf.mxu1  ;;  %v243_v49 = vmax.f32 %v197_v44, 0.0  ;;  %v1738_v58 = vpack.c.bf16 %v242_v46, %v242_v46  ;;  %v1172_v44 = vld [vmem:[%s1776_s5] sm:$0x7] }
 0x104   :  { %v245_v50 = vmax.f32 %v238_v45, 0.0  ;;  %v1736_v51 = vpack.c.bf16 %v244_v43, %v244_v43  ;;  %v199_v52 = vpop.f32.mrf.mxu0  ;;  %v1181_v46 = vrot.slane %v1172_v44, %v1731_v31  ;;  %v1177_v48 = vrot.slane %v1172_v44, %v1724_v28 }
 0x105   :  { %v240_v53 = vpop.f32.mrf.mxu1  ;;  %v247_v54 = vpack.c.bf16 %v243_v49, %v243_v49 }
 0x106   :  { %v249_v55 = vpack.c.bf16 %v245_v50, %v245_v50  ;;  %v1740_v59 = vpop.f32.mrf.mxu0 }
 0x107   :  { %v1742_v60 = vpop.f32.mrf.mxu1  ;;  %1042 = vmatprep.mubr.bf16.mxu0 %v247_v54 }
 0x108   :  { %1083 = vmatprep.mubr.bf16.mxu1 %v249_v55  ;;  %1043 = vmatmul.mubr.bf16.vlgmr.msra.gmra.mxu0 %v1738_v58  ;;  %v1746_v63 = vpop.f32.mrf.mxu0 }
 0x109   :  { %1084 = vmatmul.mubr.bf16.vlgmr.msra.gmra.mxu1 %v1736_v51  ;;  %v1401_v0 = vpop.f32.mrf.mxu1  ;;  %1352 = vmatpush3.bf16.msra.mxu0 %v1529_v56  ;;  %v1195_v56 = vld [vmem:[%s1777_s6] sm:$0x7] }
 0x10a   :  { %1374 = vmatpush3.bf16.msra.mxu1 %v1530_v57  ;;  %1124 = vmatprep.mubr.bf16.mxu0 %v247_v54  ;;  %v455_v5 = vpop.f32.mrf.mxu0  ;;  %v1185_v0 = vrot.slane %v1172_v44, %v1726_v29 }
 0x10b   :  { %1164 = vmatprep.mubr.bf16.mxu1 %v249_v55  ;;  %v495_v6 = vpop.f32.mrf.mxu1  ;;  %1353 = vmatprep.subr.bf16.mxu0 %v1531_v61  ;;  %v1200_v5 = vrot.slane %v1195_v56, %v1724_v28 }
 0x10c   :  { %1375 = vmatprep.subr.bf16.mxu1 %v1532_v62  ;;  %v456_v7 = vpop.f32.mrf.mxu0 }
 0x10d   :  { %v1402_v8 = vpop.f32.mrf.mxu1  ;;  %1354 = vmatpush3.bf16.msra.mxu0 %v1533_v1  ;;  %v1208_v7 = vrot.slane %v1195_v56, %v1726_v29 }
 0x10e   :  { %1376 = vmatpush3.bf16.msra.mxu1 %v1534_v2  ;;  %1355 = vmatprep.subr.bf16.mxu0 %v1535_v3 }
 0x10f   :  { %1377 = vmatprep.subr.bf16.mxu1 %v1536_v4 }
 0x111   :  { %1356 = vmatpush3.bf16.msra.mxu0 %v1537_v9 }
 0x112   :  { %1378 = vmatpush3.bf16.msra.mxu1 %v1538_v10  ;;  %1357 = vmatprep.subr.bf16.mxu0 %v1539_v11 }
 0x113   :  { %1379 = vmatprep.subr.bf16.mxu1 %v1540_v12 }
 0x115   :  { %1358 = vmatpush3.bf16.msra.mxu0 %v1541_v13 }
 0x116   :  { %1380 = vmatpush3.bf16.msra.mxu1 %v1542_v14  ;;  %1359 = vmatprep.subr.bf16.mxu0 %v1543_v15 }
 0x117   :  { %1381 = vmatprep.subr.bf16.mxu1 %v1544_v16 }
 0x119   :  { %1360 = vmatpush3.bf16.msra.mxu0 %v1545_v17 }
 0x11a   :  { %1382 = vmatpush3.bf16.msra.mxu1 %v1546_v18  ;;  %1361 = vmatprep.subr.bf16.mxu0 %v1547_v19 }
 0x11b   :  { %1383 = vmatprep.subr.bf16.mxu1 %v1548_v20 }
 0x11d   :  { %1362 = vmatpush3.bf16.msra.mxu0 %v1549_v21 }
 0x11e   :  { %1384 = vmatpush3.bf16.msra.mxu1 %v1550_v22  ;;  %1363 = vmatprep.subr.bf16.mxu0 %v1551_v23 }
 0x11f   :  { %1385 = vmatprep.subr.bf16.mxu1 %v1552_v24 }
 0x121   :  { %1364 = vmatpush3.bf16.msra.mxu0 %v1553_v25 }
 0x122   :  { %1386 = vmatpush3.bf16.msra.mxu1 %v1554_v26  ;;  %1365 = vmatprep.subr.bf16.mxu0 %v1555_v27 }
 0x123   :  { %1387 = vmatprep.subr.bf16.mxu1 %v1556_v30 }
 0x125   :  { %1366 = vmatpush3.bf16.msra.mxu0 %v1557_v32 }
 0x126   :  { %1388 = vmatpush3.bf16.msra.mxu1 %v1558_v33 }
 0x128   :  { %1125 = vmatmul.mubr.bf16.vlgmr.msra.gmra.mxu0 %v1738_v58 }
 0x129   :  { %1165 = vmatmul.mubr.bf16.vlgmr.msra.gmra.mxu1 %v1736_v51 }
 0x1c8   :  { %v1044_v34 = vpop.f32.mrf.mxu0 }
 0x1c9   :  { %v1085_v35 = vpop.f32.mrf.mxu1  ;;  %v1045_v43 = vadd.f32 %v1044_v34, %v1740_v59  ;;  %v1204_v59 = vrot.slane %v1195_v56, %v1731_v31 }
 0x1ca   :  { %v1046_v36 = vpop.f32.mrf.mxu0 }
 0x1cb   :  { %v1087_v37 = vpop.f32.mrf.mxu1  ;;  %v1047_v42 = vadd.f32 %v1046_v36, %v1746_v63  ;;  %v1086_v47 = vadd.f32 %v1085_v35, %v1045_v43 }
 0x1cc   :  { %v1048_v38 = vpop.f32.mrf.mxu0 }
 0x1cd   :  { %v1089_v39 = vpop.f32.mrf.mxu1  ;;  %v1088_v45 = vadd.f32 %v1087_v37, %v1047_v42  ;;  %v1189_v54 = vadd.f32 %v1177_v48, %v1086_v47 }
 0x1ce   :  { %v1049_v40 = vpop.f32.mrf.mxu0 }
 0x1cf   :  { %v1090_v41 = vpop.f32.mrf.mxu1  ;;  %v1190_v51 = vadd.f32 %v1181_v46, %v1088_v45  ;;  %v1192_v3 = vmax.f32 %v1189_v54, 0.0 }
 0x1d1   :  { %v1193_v61 = vmax.f32 %v1190_v51, 0.0  ;;  %v1212_v10 = vmul.f32 %v1200_v5, %v1192_v3 }
 0x1d3   :  { %v1213_v8 = vmul.f32 %v1204_v59, %v1193_v61 }
 0x1d5   :  { %v1215_v31 = vadd.f32 %v1213_v8, %v1212_v10 }
 0x1e8   :  { %v1367_v49 = vpop.f32.mrf.mxu0 }
 0x1e9   :  { %v1389_v50 = vpop.f32.mrf.mxu1 }
 0x1ea   :  { %v1368_v52 = vpop.f32.mrf.mxu0 }
 0x1eb   :  { %v1390_v53 = vpop.f32.mrf.mxu1  ;;  %v1369_v55 = vadd.f32 %v1368_v52, %v1367_v49 }
 0x1ec   :  { %v1370_v57 = vpop.f32.mrf.mxu0  ;;  %v1391_v63 = vadd.f32 %v1390_v53, %v1389_v50 }
 0x1ed   :  { %v1392_v58 = vpop.f32.mrf.mxu1  ;;  %v1127_v62 = vadd.f32 %v1369_v55, %v1742_v60  ;;  %v1220_v60 = vstv %s1778_s7 }
 0x1ee   :  { %v1371_v1 = vpop.f32.mrf.mxu0 }
 0x1ef   :  { %v1393_v2 = vpop.f32.mrf.mxu1  ;;  %v1167_v4 = vadd.f32 %v1391_v63, %v1127_v62 }
 0x1f1   :  { %v1191_v6 = vadd.f32 %v1185_v0, %v1167_v4 }
 0x1f3   :  { %v1194_v9 = vmax.f32 %v1191_v6, 0.0 }
 0x1f5   :  { %v1214_v11 = vmul.f32 %v1208_v7, %v1194_v9 }
 0x1f7   :  { %v1216_v12 = vadd.f32 %v1215_v31, %v1214_v11 }
 0x1f9   :  { %1217 = vadd.xlane.f32.xlu0 %v1216_v12 }
 0x282   :  { %v1218_v13 = vpop.xlane.xlu0 %1217 }
 0x283   :  { %v1221_v14 = vadd.f32 %v1220_v60, %v1218_v13 }
 0x285   :  { %1223 = vst.msk [vmem:[%s1779_s8] sm:$0xff] %vm1222_vm3, %v1221_v14 }
 0x286   :  { %1228 = vsyncpa [#allocation4], 1 }
 0x287   :  { %1229 = vsyncpa [#allocation6], 1 }
 0x288   :  { %1230 = vsyncpa [#allocation9], 1 }

</bundles_post_ra>
